<compile_context>
chip_gen: v5e
topology: v5e:2x2
jax: 0.10.0
libtpu: 0.0.40
codegen_flags: <defaults>
</compile_context>

<pallas_src>
import functools

import jax
import jax.numpy as jnp
from jax import lax
from jax.experimental import pallas as pl
from jax.experimental.pallas import tpu as pltpu


def _round_up(x, m):
    return ((x + m - 1) // m) * m


# ---------------------------------------------------------------------------
# In-kernel gather: one-hot MXU matmul over vocab chunks (bit-exact).
# ---------------------------------------------------------------------------
def _make_gather_tile(tok, d_pad, v_pad, v_chunk):
    """Returns gather(ids_row, emb_ref) -> (tok, d_pad) f32 gathered rows."""
    n_chunks = v_pad // v_chunk

    def one_chunk(off, ids_row, emb_ref):
        # Build the one-hot transposed, (v_chunk, tok), so the ids (a lane
        # vector) need no cross-lane relayout: oh_t[v, t] = (ids[t] == off + v)
        v_iota = lax.broadcasted_iota(jnp.int32, (v_chunk, tok), 0) + off
        oh_t = (v_iota == ids_row).astype(emb_ref.dtype)
        emb_c = emb_ref[pl.ds(off, v_chunk), :]                 # (v_chunk, d_pad)
        # "vt,vd->td": exactly one 1 per column -> exact row copy with f32
        # accumulation; runs on the otherwise-idle MXU.
        return lax.dot_general(
            oh_t, emb_c, (((0,), (0,)), ((), ())),
            preferred_element_type=jnp.float32,
            precision=lax.Precision.HIGHEST)

    def gather(ids_row, emb_ref):
        if n_chunks == 1:
            return one_chunk(0, ids_row, emb_ref)

        def body(c, acc):
            off = pl.multiple_of(c * v_chunk, v_chunk)
            return acc + one_chunk(off, ids_row, emb_ref)

        return lax.fori_loop(0, n_chunks, body,
                             jnp.zeros((tok, d_pad), jnp.float32), unroll=2)

    return gather


def _make_kernels(tok, d_pad, v_pad, v_chunk, s_blocks):
    gather = _make_gather_tile(tok, d_pad, v_pad, v_chunk)

    def _ids_row(ids_ref):
        # ids_ref: (B * s_blocks, tok) int32, VMEM-resident; one row per tile.
        b = pl.program_id(0)
        s = pl.program_id(1)
        return ids_ref[pl.ds(b * s_blocks + s, 1), :]            # (1, tok)

    def embed_kernel(ids_ref, emb_ref, out_ref):
        acc = gather(_ids_row(ids_ref), emb_ref)
        out_ref[...] = acc.astype(out_ref.dtype)                 # dense (tok, d_pad) store

    def embed_dropout_kernel(ids_ref, emb_ref, mask_ref, out_ref):
        b = pl.program_id(0)
        acc = gather(_ids_row(ids_ref), emb_ref)
        mask_row = mask_ref[pl.ds(b, 1), :]                      # (1, d_pad) f32
        out_ref[...] = (acc * mask_row).astype(out_ref.dtype)    # one broadcast VPU mul

    return embed_kernel, embed_dropout_kernel


# ---------------------------------------------------------------------------
# VMEM budgeting (generation-aware)
# ---------------------------------------------------------------------------
def _vmem_limit_bytes(resident_bytes, transient_bytes):
    try:
        capacity = int(pltpu.get_tpu_info().vmem_capacity_bytes)   # per-core
    except Exception:
        capacity = 64 << 20          # safe minimum (v7x per-TC)
    need = resident_bytes + transient_bytes + (4 << 20)            # + slack
    cap = capacity - (8 << 20)                                     # compiler headroom
    if need > cap:
        # TODO(synk): resident table does not fit -> needs the vocab-tiling /
        # HBM-gather fallback; clamp so the compiler at least gets a valid limit.
        need = cap
    return max(need, 16 << 20)       # always explicit (v5e default is 16 MiB)


# ---------------------------------------------------------------------------
# Wrapper
# ---------------------------------------------------------------------------
def pretrained_embedding_forward(embeddings, ids, *, dropout_p=0.0,
                                 training=False, rng_key=None, tok_block=256):
    """embeddings: (V, D) float table.  ids: (B, S) integer ids.  -> (B, S, D)."""
    embeddings = jnp.asarray(embeddings)
    ids = jnp.asarray(ids)
    V, D = embeddings.shape
    B, S = ids.shape
    dtype = embeddings.dtype
    itemsize = jnp.dtype(dtype).itemsize

    # ---- static tiling -----------------------------------------------------
    tok = _round_up(min(int(tok_block), _round_up(S, 8)), 8)   # sublane-aligned tile
    d_pad = _round_up(D, 128)                                  # lane-dense output
    v_chunk = min(512, _round_up(V, 128))                      # MXU-aligned vocab chunk
    v_pad = _round_up(V, v_chunk)
    s_blocks = _round_up(S, tok) // tok
    s_pad = s_blocks * tok
    n_pad = B * s_pad

    # ---- host-side padding / layout -----------------------------------------
    emb_p = embeddings
    if (v_pad, d_pad) != (V, D):
        emb_p = jnp.pad(embeddings, ((0, v_pad - V), (0, d_pad - D)))
    ids_p = ids.astype(jnp.int32)
    if s_pad != S:
        ids_p = jnp.pad(ids_p, ((0, 0), (0, s_pad - S)))       # pad with id 0 (valid row)
    ids_tiles = ids_p.reshape(B * s_blocks, tok)               # one row per output tile

    use_mask = bool(training) and float(dropout_p) > 0.0

    # Resident inputs (constant index_map): budget 2x (possible double-buffer).
    resident = 2 * (v_pad * d_pad * itemsize + ids_tiles.size * 4)
    transient = 2 * tok * d_pad * itemsize                     # double-buffered out tile
    transient += tok * (v_chunk + 2 * d_pad) * 4               # one-hot + f32 acc

    ids_spec = pl.BlockSpec((B * s_blocks, tok), lambda b, s: (0, 0))
    emb_spec = pl.BlockSpec((v_pad, d_pad), lambda b, s: (0, 0))
    out_spec = pl.BlockSpec((tok, d_pad), lambda b, s: (b * s_blocks + s, 0))

    embed_kernel, embed_dropout_kernel = _make_kernels(tok, d_pad, v_pad,
                                                       v_chunk, s_blocks)

    if use_mask:
        if rng_key is None:
            raise ValueError("training=True with dropout_p > 0 requires rng_key")
        # SpatialDropout (= Dropout2d over channels): one Bernoulli draw per
        # (batch, channel), scaled by 1/(1-p).  Kept in f32 (no bf16 VPU on v5e).
        keep = jax.random.bernoulli(rng_key, 1.0 - float(dropout_p), (B, D))
        mask = keep.astype(jnp.float32) / jnp.float32(1.0 - float(dropout_p))
        mask_p = jnp.pad(mask, ((0, 0), (0, d_pad - D))) if d_pad != D else mask
        resident += 2 * B * d_pad * 4
        in_specs = [ids_spec, emb_spec,
                    pl.BlockSpec((B, d_pad), lambda b, s: (0, 0))]
        kernel = embed_dropout_kernel
        operands = (ids_tiles, emb_p, mask_p)
    else:
        in_specs = [ids_spec, emb_spec]
        kernel = embed_kernel
        operands = (ids_tiles, emb_p)

    out = pl.pallas_call(
        kernel,
        out_shape=jax.ShapeDtypeStruct((n_pad, d_pad), dtype),
        grid_spec=pltpu.PrefetchScalarGridSpec(
            num_scalar_prefetch=0,
            grid=(B, s_blocks),
            in_specs=in_specs,
            out_specs=out_spec,
        ),
        compiler_params=pltpu.CompilerParams(
            dimension_semantics=("parallel", "parallel"),
            vmem_limit_bytes=_vmem_limit_bytes(resident, transient),
        ),
    )(*operands)

    out = out.reshape(B, s_pad, d_pad)          # contiguous reshape (free)
    if s_pad != S or d_pad != D:
        out = out[:, :S, :D]
    return out


# ---------------------------------------------------------------------------
# Self-test
# ---------------------------------------------------------------------------
if __name__ == "__main__":
    V, D = 64, 128          # vocab size, embedding dim
    B, S = 2, 8             # batch, sequence length

    key = jax.random.PRNGKey(0)
    k_emb, k_ids, k_drop = jax.random.split(key, 3)
    embeddings = jax.random.normal(k_emb, (V, D), dtype=jnp.float32)
    ids = jax.random.randint(k_ids, (B, S), 0, V, dtype=jnp.int32)

    # Eval / p==0 path: SpatialDropout is the identity -> pure lookup.
    fwd = jax.jit(functools.partial(pretrained_embedding_forward,
                                    dropout_p=0.0, training=False))
    out = jax.block_until_ready(fwd(embeddings, ids))
    ref = jnp.take(embeddings, ids, axis=0)
    assert out.shape == (B, S, D)
    assert jnp.allclose(out, ref, atol=1e-6, rtol=1e-6)

    # Training path: per-(batch, channel) mask, scaled by 1/(1-p).
    p = 0.5
    out_tr = jax.block_until_ready(
        pretrained_embedding_forward(embeddings, ids, dropout_p=p,
                                     training=True, rng_key=k_drop))
    keep = jax.random.bernoulli(k_drop, 1.0 - p, (B, D))
    mask = keep.astype(jnp.float32) / jnp.float32(1.0 - p)
    ref_tr = ref * mask[:, None, :]
    assert jnp.allclose(out_tr, ref_tr, atol=1e-6, rtol=1e-6)

    print("KERNEL_OK")
</pallas_src>

<mosaic_0001>
module attributes {stable_mosaic.version = 11 : i64} {
  func.func @embed_kernel(%arg0: i32, %arg1: i32, %arg2: memref<2x8xi32, #tpu.memory_space<vmem>>, %arg3: memref<128x128xf32, #tpu.memory_space<vmem>>, %arg4: memref<8x128xf32, #tpu.memory_space<vmem>>) attributes {dimension_semantics = [#tpu.dimension_semantics<parallel>, #tpu.dimension_semantics<parallel>], iteration_bounds = array<i64: 2, 1>, scalar_prefetch = 0 : i64, scratch_operands = 0 : i64, tpu.core_type = #tpu.core_type<tc>, window_params = [{pipeline_mode = #tpu.pipeline_mode<synchronous>, transform_indices = @transform_0, window_bounds = array<i64: 2, 8>}, {pipeline_mode = #tpu.pipeline_mode<synchronous>, transform_indices = @transform_1, window_bounds = array<i64: 128, 128>}, {transform_indices = @transform_2, window_bounds = array<i64: 8, 128>}]} {
    %c1_i32 = arith.constant 1 : i32
    %0 = arith.muli %arg0, %c1_i32 : i32
    %1 = arith.addi %0, %arg1 : i32
    %2 = arith.index_cast %1 : i32 to index
    %c0 = arith.constant 0 : index
    %3 = vector.load %arg2[%2, %c0] : memref<2x8xi32, #tpu.memory_space<vmem>>, vector<1x8xi32>
    %4 = tpu.iota {dimensions = array<i32: 0>} : vector<128x8xi32>
    %c0_i32 = arith.constant 0 : i32
    %5 = vector.broadcast %c0_i32 : i32 to vector<128x8xi32>
    %6 = arith.addi %4, %5 : vector<128x8xi32>
    %7 = vector.broadcast %3 : vector<1x8xi32> to vector<128x8xi32>
    %8 = arith.cmpi eq, %6, %7 : vector<128x8xi32>
    %9 = arith.extui %8 : vector<128x8xi1> to vector<128x8xi32>
    %10 = arith.sitofp %9 : vector<128x8xi32> to vector<128x8xf32>
    %c0_0 = arith.constant 0 : index
    %c0_1 = arith.constant 0 : index
    %11 = vector.load %arg3[%c0_0, %c0_1] : memref<128x128xf32, #tpu.memory_space<vmem>>, vector<128x128xf32>
    %cst = arith.constant dense<0.000000e+00> : vector<8x128xf32>
    %12 = tpu.matmul %10, %11, %cst {dimension_numbers = #tpu.dot_dimension_numbers<[0], [0], [1], [1], [0, 1, 1, 1], [], []>, precision = #tpu.contract_precision<fp32>} : vector<128x8xf32>, vector<128x128xf32>, vector<8x128xf32> -> vector<8x128xf32>
    %c0_2 = arith.constant 0 : index
    %c0_3 = arith.constant 0 : index
    %13 = vector.load %arg4[%c0_2, %c0_3] : memref<8x128xf32, #tpu.memory_space<vmem>>, vector<8x128xf32>
    tpu.vector_store %arg4[%c0_2, %c0_3], %12 {strides = array<i32>} : memref<8x128xf32, #tpu.memory_space<vmem>>, vector<8x128xf32>,
    return
  }
  func.func @transform_0(%arg0: i32, %arg1: i32) -> (i32, i32) {
    %c0_i32 = arith.constant 0 : i32
    %c0_i32_0 = arith.constant 0 : i32
    %c0_i32_1 = arith.constant 0 : i32
    return %c0_i32, %c0_i32_0 : i32, i32
  }
  func.func @transform_1(%arg0: i32, %arg1: i32) -> (i32, i32) {
    %c0_i32 = arith.constant 0 : i32
    %c0_i32_0 = arith.constant 0 : i32
    %c0_i32_1 = arith.constant 0 : i32
    return %c0_i32, %c0_i32_0 : i32, i32
  }
  func.func @transform_2(%arg0: i32, %arg1: i32) -> (i32, i32) {
    %c1_i32 = arith.constant 1 : i32
    %0 = arith.muli %arg0, %c1_i32 : i32
    %1 = arith.addi %0, %arg1 : i32
    %c0_i32 = arith.constant 0 : i32
    %c0_i32_0 = arith.constant 0 : i32
    return %1, %c0_i32 : i32, i32
  }
}

</mosaic_0001>

<bundles_post_ra>
// kernel: pretrained_embedding_forward.1
= control target key start
LH: loop header
LB: loop body
LE: loop exit
PB: predicated region body
PF: predicated region fallthrough
CT: control target
= control target key end

     0   :  { %7 = vsyncpa [#allocation3], 0  ;;  %s1289_s0 = inlined_call_operand.vmem [shape: s32[2,8], index: 0, kind: input, shape index: {}]   ;;  %s1290_s1 = inlined_call_operand.vmem [shape: f32[128,128], index: 1, kind: input, shape index: {}]   ;;  %s1291_s2 = inlined_call_operand.hbm [shape: f32[16,128], index: 2, kind: output, shape index: {}]  }
   0x1   :  { %9 = vsyncpa [#allocation3 + $0x1], 0  ;;  %s849_s9 = smov 0   ;;  %s851_s10 = smov 0  }
   0x2   :  { %s853_s11 = smov 0   ;;  %s855_s12 = smov 0  }
   0x3   :  { %s857_s13 = smov 0   ;;  %s859_s14 = smov 0  }
   0x4 LB: > { %s671_s15 = sadd.s32 4294967295, %s831_s14   ;;  %s672_s16 = sadd.s32 4294967294, %s831_s14   ;;  %s831_s14 = sphi %s859_s14, %s15_s14   ;;  %s827_s13 = sphi %s857_s13, %s1298_s13   ;;  %s823_s12 = sphi %s855_s12, %s1297_s12   ;;  %s819_s11 = sphi %s853_s11, %s1296_s11   ;;  %s815_s10 = sphi %s851_s10, %s1295_s10   ;;  %s811_s9 = sphi %s849_s9, %s1294_s9  }
   0x5   : > { %s27_s17 = sadd.s32 1, %s827_s13  ;;  %s78_s18 = sadd.s32 1, %s819_s11 }
   0x6   : > { %p29_p0 = scmp.ge.s32.totalorder %s27_s17, 2  ;;  %p88_p1 = scmp.ne.s32.totalorder %s819_s11, %s815_s10 }
   0x7   : > { %p89_p2 = scmp.eq.s32.totalorder %s671_s15, 1  ;;  %p94_p3 = scmp.ne.s32.totalorder %s815_s10, %s811_s9 }
   0x8   : > { %s1300_s17 = smov (%p29_p0, %s27_s17), 0  ;;  %p95_p5 = scmp.eq.s32.totalorder %s672_s16, 1 }
   0x9   : > { %p889_p4 = por %p89_p2, %p88_p1  ;;  %s75_s20 = ssub.s32 %s827_s13, %s1300_s17 }
   0xa   : > { %p674_p6 = scmp.ge.s32.totalorder %s831_s14, 1  ;;  %p76_p7 = scmp.eq.s32.totalorder %s75_s20, 0 }
   0xb   : > { %p896_p8 = por %p95_p5, %p94_p3  ;;  %p119_p9 = scmp.lt.s32.totalorder %s831_s14, 3 }
   0xc   : > { %s902_s22 = scalar_select %p76_p7, %s819_s11, %s78_s18  }
   0xd   : > { %p120_p10 = pnand %p674_p6, %p119_p9 }
   0xe   : > { %s138_s25 = scalar_lea.vmem (!%p120_p10), %s1289_s0, %s823_s12  ;;  %s133_s20 = sand.u32 (!%p120_p10), 1, %s815_s10  }
   0xf   : > { %123 = sbr.rel (%p120_p10) target bundleno = 342 (0x156), region = 28  ;;  %s675_s23 = sshll.u32 (!%p120_p10), %s133_s20, 3 }
  0x10   : > { %s693_s24 = sshll.u32 (!%p120_p10), %s823_s12, 3  ;;  %s135_s28 = scalar_lea.vmem (!%p120_p10), [#allocation2], %s675_s23 }
  0x11   : > { %s608_s27 = scalar_lea.hbm (!%p120_p10), %s1291_s2, %s693_s24  ;;  %s610_s29 = sshll.u32 (!%p120_p10), %s135_s28, 4  ;;  %s611_s29 = int_to_ptr.vmem [resolvable:$true] %s610_s29 }
  0x12   : > { %s612_s30 = sshll.u32 (!%p120_p10), %s608_s27, 4  ;;  %s597_s3 = scalar_lea.sflag (!%p120_p10), [#allocation3], %s133_s20  ;;  %s613_s30 = int_to_ptr.hbm [resolvable:$true] %s612_s30 }
  0x13   : > { %s767_s12 = sshra.s32 (!%p120_p10), %s613_s30, 4  ;;  %s773_s7 = scalar_lea.hbm (!%p120_p10), %s1291_s2, 16  ;;  %s768_s12 = int_to_ptr.hbm [resolvable:$true] %s767_s12 }
  0x14   : > { %v140_v0 = vlaneseq  ;;  %v908_v1 = vld [vmem:[%s138_s25] ss:$0 sm:$0xff]  ;;  %v833_v4 = vmov 0.0   ;;  %v221_v24 = vld [vmem:[%s1290_s1 + $0x78] sm:$0xff]  ;;  %v220_v26 = vld [vmem:[%s1290_s1 + $0x70] sm:$0xff]  ;;  %s769_s4 = scalar_lea.hbm %s768_s12, 8  ;;  %p774_p0 = scmp.lt.s32.totalorder %s768_s12, %s1291_s2 }
  0x15   : > { %v946_v25 = vand.u32 4294901760, %v221_v24  ;;  %v955_v28 = vand.u32 4294901760, %v220_v26  ;;  %v219_v29 = vld [vmem:[%s1290_s1 + $0x68] sm:$0xff]  ;;  %v218_v34 = vld [vmem:[%s1290_s1 + $0x60] sm:$0xff]  ;;  %v217_v41 = vld [vmem:[%s1290_s1 + $0x58] sm:$0xff]  ;;  %p770_p11 = scmp.ne.s32.totalorder %s768_s12, %s769_s4  ;;  %p775_p1 = scmp.lt.s32.totalorder %s773_s7, %s769_s4 }
  0x16   : > { %v910_v2 = vshrl.u32 %v140_v0, 7  ;;  %v966_v32 = vand.u32 4294901760, %v219_v29  ;;  %v982_v38 = vand.u32 4294901760, %v218_v34  ;;  %v1001_v46 = vand.u32 4294901760, %v217_v41  ;;  %v216_v47 = vld [vmem:[%s1290_s1 + $0x50] sm:$0xff]  ;;  %v215_v53 = vld [vmem:[%s1290_s1 + $0x48] sm:$0xff] }
  0x17   : > { %v953_v27 = vsub.f32 %v221_v24, %v946_v25  ;;  %255 = vmatpush.msra.mxu0 %v946_v25  ;;  %451 = vmatpush.msra.mxu3 %v946_v25  ;;  %v964_v31 = vsub.f32 %v220_v26, %v955_v28  ;;  %v1011_v51 = vand.u32 4294901760, %v216_v47  ;;  %v1031_v58 = vand.u32 4294901760, %v215_v53  ;;  %v214_v59 = vld [vmem:[%s1290_s1 + $0x40] sm:$0xff]  ;;  %p771_p12 = pnand %p770_p11, %p889_p4  ;;  %p776_p2 = por %p775_p1, %p774_p0 }
  0x18   : > { %vm158_vm0 = vcmp.eq.s32.totalorder %v910_v2, %v908_v1  ;;  %v142_v3 = vadd.s32 8, %v910_v2  ;;  %v143_v7 = vadd.s32 16, %v910_v2  ;;  %v144_v9 = vadd.s32 24, %v910_v2 }
  0x19   : > { %v676_v5 = vsel %vm158_vm0, 1.0, %v833_v4  ;;  %v145_v11 = vadd.s32 32, %v910_v2  ;;  %v146_v13 = vadd.s32 40, %v910_v2  ;;  %v147_v15 = vadd.s32 48, %v910_v2  ;;  %257 = vmatpush.msra.mxu0 %v955_v28  ;;  %398 = vmatpush.msra.mxu2 %v953_v27  ;;  %p772_p13 = pneg %p771_p12 }
  0x1a   : > { %222 = vxpose.xlu0.b32.start [1/16] (narrow) %v676_v5, 8  ;;  %vm159_vm1 = vcmp.eq.s32.totalorder %v142_v3, %v908_v1  ;;  %vm160_vm2 = vcmp.eq.s32.totalorder %v143_v7, %v908_v1  ;;  %vm161_vm3 = vcmp.eq.s32.totalorder %v144_v9, %v908_v1  ;;  %v148_v17 = vadd.s32 56, %v910_v2  ;;  %453 = vmatpush.msra.mxu3 %v955_v28 }
  0x1b   : > { %v677_v6 = vsel %vm159_vm1, 1.0, %v833_v4  ;;  %v678_v8 = vsel %vm160_vm2, 1.0, %v833_v4  ;;  %v679_v10 = vsel %vm161_vm3, 1.0, %v833_v4  ;;  %vm162_vm4 = vcmp.eq.s32.totalorder %v145_v11, %v908_v1  ;;  %259 = vmatpush.msra.mxu0 %v966_v32  ;;  %401 = vmatpush.msra.mxu2 %v964_v31  ;;  %p777_p3 = pnand %p776_p2, %p772_p13 }
  0x1c   : > { %v680_v12 = vsel %vm162_vm4, 1.0, %v833_v4  ;;  %vm163_vm5 = vcmp.eq.s32.totalorder %v146_v13, %v908_v1  ;;  %vm164_vm6 = vcmp.eq.s32.totalorder %v147_v15, %v908_v1  ;;  %vm165_vm7 = vcmp.eq.s32.totalorder %v148_v17, %v908_v1  ;;  %455 = vmatpush.msra.mxu3 %v966_v32  ;;  %v212_v13 = vld [vmem:[%s1290_s1 + $0x30] sm:$0xff]  ;;  %v210_v15 = vld [vmem:[%s1290_s1 + $0x20] sm:$0xff] }
  0x1d   : > { %v681_v14 = vsel %vm163_vm5, 1.0, %v833_v4  ;;  %v682_v16 = vsel %vm164_vm6, 1.0, %v833_v4  ;;  %v683_v18 = vsel %vm165_vm7, 1.0, %v833_v4  ;;  %v149_v19 = vadd.s32 64, %v910_v2  ;;  %261 = vmatpush.msra.mxu0 %v982_v38 }
  0x1e   : > { %v150_v21 = vadd.s32 72, %v910_v2  ;;  %v151_v23 = vadd.s32 80, %v910_v2  ;;  %v297_v30 = vand.u32 4294901760, %v953_v27  ;;  %v303_v36 = vand.u32 4294901760, %v964_v31  ;;  %457 = vmatpush.msra.mxu3 %v982_v38 }
  0x1f   : > { %vm166_vm8 = vcmp.eq.s32.totalorder %v149_v19, %v908_v1  ;;  %v980_v37 = vsub.f32 %v219_v29, %v966_v32  ;;  %v152_v39 = vadd.s32 88, %v910_v2  ;;  %v153_v40 = vadd.s32 96, %v910_v2  ;;  %263 = vmatpush.msra.mxu0 %v1001_v46 }
  0x20   : > { %v684_v20 = vsel %vm166_vm8, 1.0, %v833_v4  ;;  %vm167_vm9 = vcmp.eq.s32.totalorder %v150_v21, %v908_v1  ;;  %vm168_vm10 = vcmp.eq.s32.totalorder %v151_v23, %v908_v1  ;;  %v298_v35 = vsub.f32 %v953_v27, %v297_v30  ;;  %459 = vmatpush.msra.mxu3 %v1001_v46  ;;  %v208_v21 = vld [vmem:[%s1290_s1 + $0x10] sm:$0xff] }
  0x21   : > { %v685_v22 = vsel %vm167_vm9, 1.0, %v833_v4  ;;  %v686_v33 = vsel %vm168_vm10, 1.0, %v833_v4  ;;  %v304_v43 = vsub.f32 %v964_v31, %v303_v36  ;;  %v309_v44 = vand.u32 4294901760, %v980_v37  ;;  %404 = vmatpush.msra.mxu2 %v980_v37  ;;  %265 = vmatpush.msra.mxu0 %v1011_v51 }
  0x22   : > { %223 = vxpose.xlu0.b32.cont [2/16] (narrow) %v677_v6, 8  ;;  %v299_v42 = vand.u32 4294901760, %v298_v35  ;;  %v997_v45 = vsub.f32 %v218_v34, %v982_v38  ;;  %vm169_vm11 = vcmp.eq.s32.totalorder %v152_v39, %v908_v1  ;;  %v1016_v52 = vsub.f32 %v217_v41, %v1001_v46  ;;  %461 = vmatpush.msra.mxu3 %v1011_v51  ;;  %v213_v6 = vld [vmem:[%s1290_s1 + $0x38] sm:$0xff]  ;;  %v207_v39 = vld [vmem:[%s1290_s1 + $0x8] sm:$0xff] }
  0x23   : > { %v305_v48 = vand.u32 4294901760, %v304_v43  ;;  %v310_v49 = vsub.f32 %v980_v37, %v309_v44  ;;  %vm170_vm12 = vcmp.eq.s32.totalorder %v153_v40, %v908_v1  ;;  %v1028_v56 = vsub.f32 %v216_v47, %v1011_v51  ;;  %267 = vmatpush.msra.mxu0 %v1031_v58  ;;  %v206_v47 = vld [vmem:[%s1290_s1] sm:$0xff] }
  0x24   : > { %300 = vmatpush.msra.mxu1 %v299_v42  ;;  %v315_v50 = vand.u32 4294901760, %v997_v45  ;;  %407 = vmatpush.msra.mxu2 %v997_v45  ;;  %v321_v57 = vand.u32 4294901760, %v1016_v52  ;;  %v687_v60 = vsel %vm169_vm11, 1.0, %v833_v4  ;;  %v1040_v63 = vand.u32 4294901760, %v214_v59 }
  0x25   : > { %v311_v54 = vand.u32 4294901760, %v310_v49  ;;  %v327_v62 = vand.u32 4294901760, %v1028_v56  ;;  %v1046_v0 = vsel %vm170_vm12, 1.0, %v833_v4  ;;  %v1052_v5 = vsub.f32 %v215_v53, %v1031_v58  ;;  %463 = vmatpush.msra.mxu3 %v1031_v58 }
  0x26   : > { %306 = vmatpush.msra.mxu1 %v305_v48  ;;  %v316_v55 = vsub.f32 %v997_v45, %v315_v50  ;;  %410 = vmatpush.msra.mxu2 %v1016_v52  ;;  %v322_v3 = vsub.f32 %v1016_v52, %v321_v57  ;;  %v1060_v7 = vadd.s32 104, %v910_v2  ;;  %v1066_v9 = vsub.f32 %v214_v59, %v1040_v63 }
  0x27   : > { %269 = vmatpush.msra.mxu0 %v1040_v63  ;;  %v1086_v19 = vand.u32 4294901760, %v212_v13  ;;  %465 = vmatpush.msra.mxu3 %v1040_v63  ;;  %v1101_v24 = vand.u32 4294901760, %v210_v15  ;;  %v1113_v35 = vand.u32 4294901760, %v208_v21 }
  0x28   : > { %312 = vmatpush.msra.mxu1 %v311_v54  ;;  %v317_v61 = vand.u32 4294901760, %v316_v55  ;;  %413 = vmatpush.msra.mxu2 %v1028_v56  ;;  %v323_v11 = vand.u32 4294901760, %v322_v3  ;;  %v339_v17 = vand.u32 4294901760, %v1066_v9  ;;  %vm171_vm13 = vcmp.eq.s32.totalorder %v1060_v7, %v908_v1 }
  0x29   : > { %v1111_v34 = vsub.f32 %v212_v13, %v1086_v19  ;;  %v1124_v42 = vsub.f32 %v210_v15, %v1101_v24  ;;  %v1138_v54 = vsub.f32 %v208_v21, %v1113_v35 }
  0x2a   : > { %224 = vxpose.xlu0.b32.cont [3/16] (narrow) %v678_v8, 8  ;;  %318 = vmatpush.msra.mxu1 %v317_v61  ;;  %v328_v8 = vsub.f32 %v1028_v56, %v327_v62  ;;  %v340_v29 = vsub.f32 %v1066_v9, %v339_v17  ;;  %v1146_v61 = vand.u32 4294901760, %v207_v39 }
  0x2b   : > { %416 = vmatpush.msra.mxu2 %v1052_v5  ;;  %v351_v53 = vand.u32 4294901760, %v1111_v34  ;;  %v363_v59 = vand.u32 4294901760, %v1124_v42 }
  0x2c   : > { %324 = vmatpush.msra.mxu1 %v323_v11  ;;  %v341_v48 = vand.u32 4294901760, %v340_v29 }
  0x2d   : > { %419 = vmatpush.msra.mxu2 %v1066_v9  ;;  %v364_v13 = vsub.f32 %v1124_v42, %v363_v59 }
  0x2f   : > { %v365_v29 = vand.u32 4294901760, %v364_v13 }
  0x32   : > { %225 = vxpose.xlu0.b32.cont [4/16] (narrow) %v679_v10, 8  ;;  %v1068_v10 = vand.u32 4294901760, %v213_v6 }
  0x34   : > { %271 = vmatpush.msra.mxu0 %v1068_v10  ;;  %467 = vmatpush.msra.mxu3 %v1068_v10 }
  0x36   : > { %273 = vmatpush.msra.mxu0 %v1086_v19  ;;  %469 = vmatpush.msra.mxu3 %v1086_v19 }
  0x3a   : > { %226 = vxpose.xlu0.b32.cont [5/16] (narrow) %v680_v12, 8  ;;  %v333_v12 = vand.u32 4294901760, %v1052_v5 }
  0x42   : > { %227 = vxpose.xlu0.b32.cont [6/16] (narrow) %v681_v14, 8  ;;  %v211_v14 = vld [vmem:[%s1290_s1 + $0x28] sm:$0xff] }
  0x43   : > { %v1099_v23 = vand.u32 4294901760, %v211_v14 }
  0x45   : > { %v1121_v41 = vsub.f32 %v211_v14, %v1099_v23  ;;  %275 = vmatpush.msra.mxu0 %v1099_v23  ;;  %471 = vmatpush.msra.mxu3 %v1099_v23  ;;  %v375_v14 = vand.u32 4294901760, %v1138_v54 }
  0x47   : > { %v357_v55 = vand.u32 4294901760, %v1121_v41  ;;  %277 = vmatpush.msra.mxu0 %v1101_v24  ;;  %473 = vmatpush.msra.mxu3 %v1101_v24  ;;  %v376_v7 = vsub.f32 %v1138_v54, %v375_v14 }
  0x49   : > { %v358_v11 = vsub.f32 %v1121_v41, %v357_v55 }
  0x4a   : > { %228 = vxpose.xlu0.b32.cont [7/16] (narrow) %v682_v16, 8  ;;  %v329_v16 = vand.u32 4294901760, %v328_v8  ;;  %v1151_v8 = vand.u32 4294901760, %v206_v47 }
  0x4c   : > { %330 = vmatpush.msra.mxu1 %v329_v16  ;;  %v1164_v16 = vsub.f32 %v207_v39, %v1146_v61 }
  0x52   : > { %229 = vxpose.xlu0.b32.cont [8/16] (narrow) %v683_v18, 8  ;;  %v1084_v18 = vsub.f32 %v213_v6, %v1068_v10  ;;  %v352_v6 = vsub.f32 %v1111_v34, %v351_v53 }
  0x54   : > { %422 = vmatpush.msra.mxu2 %v1084_v18  ;;  %v353_v15 = vand.u32 4294901760, %v352_v6 }
  0x56   : > { %425 = vmatpush.msra.mxu2 %v1111_v34 }
  0x58   : > { %428 = vmatpush.msra.mxu2 %v1121_v41 }
  0x5a   : > { %230 = vxpose.xlu0.b32.cont [9/16] (narrow) %v684_v20, 8  ;;  %v209_v20 = vld [vmem:[%s1290_s1 + $0x18] sm:$0xff]  ;;  %431 = vmatpush.msra.mxu2 %v1124_v42 }
  0x5b   : > { %v1104_v26 = vand.u32 4294901760, %v209_v20 }
  0x5d   : > { %v1127_v43 = vsub.f32 %v209_v20, %v1104_v26  ;;  %v1168_v20 = vsub.f32 %v206_v47, %v1151_v8  ;;  %279 = vmatpush.msra.mxu0 %v1104_v26  ;;  %475 = vmatpush.msra.mxu3 %v1104_v26  ;;  %v155_v47 = vadd.s32 112, %v910_v2 }
  0x5f   : > { %v387_v39 = vand.u32 4294901760, %v1168_v20  ;;  %281 = vmatpush.msra.mxu0 %v1113_v35  ;;  %434 = vmatpush.msra.mxu2 %v1127_v43  ;;  %vm172_vm14 = vcmp.eq.s32.totalorder %v155_v47, %v908_v1 }
  0x60   : > { %477 = vmatpush.msra.mxu3 %v1113_v35 }
  0x61   : > { %283 = vmatpush.msra.mxu0 %v1146_v61  ;;  %437 = vmatpush.msra.mxu2 %v1138_v54  ;;  %v388_v6 = vsub.f32 %v1168_v20, %v387_v39 }
  0x62   : > { %231 = vxpose.xlu0.b32.cont [10/16] (narrow) %v685_v22, 8  ;;  %v334_v22 = vsub.f32 %v1052_v5, %v333_v12  ;;  %479 = vmatpush.msra.mxu3 %v1146_v61 }
  0x63   : > { %285 = vmatpush.msra.mxu0 %v1151_v8  ;;  %440 = vmatpush.msra.mxu2 %v1164_v16  ;;  %v389_v13 = vand.u32 4294901760, %v388_v6 }
  0x64   : > { %v335_v40 = vand.u32 4294901760, %v334_v22  ;;  %v381_v22 = vand.u32 4294901760, %v1164_v16  ;;  %481 = vmatpush.msra.mxu3 %v1151_v8 }
  0x65   : > { %492 = vmatpush.msrb.mxu0 %v297_v30  ;;  %443 = vmatpush.msra.mxu2 %v1168_v20 }
  0x66   : > { %336 = vmatpush.msra.mxu1 %v335_v40  ;;  %v689_v40 = vsel %vm171_vm13, 1.0, %v833_v4 }
  0x67   : > { %496 = vmatpush.msrb.mxu0 %v303_v36 }
  0x68   : > { %342 = vmatpush.msra.mxu1 %v341_v48 }
  0x69   : > { %500 = vmatpush.msrb.mxu0 %v309_v44 }
  0x6a   : > { %232 = vxpose.xlu0.b32.cont [11/16] (narrow) %v686_v33, 8  ;;  %v345_v33 = vand.u32 4294901760, %v1084_v18 }
  0x6b   : > { %504 = vmatpush.msrb.mxu0 %v315_v50 }
  0x6c   : > { %v346_v49 = vsub.f32 %v1084_v18, %v345_v33 }
  0x6d   : > { %508 = vmatpush.msrb.mxu0 %v321_v57 }
  0x6e   : > { %v347_v3 = vand.u32 4294901760, %v346_v49  ;;  %v382_v49 = vsub.f32 %v1164_v16, %v381_v22 }
  0x6f   : > { %512 = vmatpush.msrb.mxu0 %v327_v62 }
  0x70   : > { %348 = vmatpush.msra.mxu1 %v347_v3  ;;  %v377_v3 = vand.u32 4294901760, %v376_v7 }
  0x71   : > { %516 = vmatpush.msrb.mxu0 %v333_v12 }
  0x72   : > { %233 = vxpose.xlu0.b32.cont [12/16] (narrow) %v687_v60, 8  ;;  %v369_v60 = vand.u32 4294901760, %v1127_v43  ;;  %354 = vmatpush.msra.mxu1 %v353_v15  ;;  %v690_v15 = vsel %vm172_vm14, 1.0, %v833_v4 }
  0x73   : > { %520 = vmatpush.msrb.mxu0 %v339_v17 }
  0x74   : > { %v370_v21 = vsub.f32 %v1127_v43, %v369_v60 }
  0x75   : > { %524 = vmatpush.msrb.mxu0 %v345_v33 }
  0x76   : > { %v371_v48 = vand.u32 4294901760, %v370_v21 }
  0x77   : > { %528 = vmatpush.msrb.mxu0 %v351_v53 }
  0x79   : > { %532 = vmatpush.msrb.mxu0 %v357_v55 }
  0x7a   : > { %234 = vxpose.xlu0.b32.cont [13/16] (narrow) %v1046_v0, 8  ;;  %v359_v0 = vand.u32 4294901760, %v358_v11  ;;  %v383_v11 = vand.u32 4294901760, %v382_v49 }
  0x7b   : > { %536 = vmatpush.msrb.mxu0 %v363_v59 }
  0x7c   : > { %360 = vmatpush.msra.mxu1 %v359_v0  ;;  %v156_v0 = vadd.s32 120, %v910_v2 }
  0x7d   : > { %540 = vmatpush.msrb.mxu0 %v369_v60 }
  0x7e   : > { %366 = vmatpush.msra.mxu1 %v365_v29  ;;  %vm173_vm15 = vcmp.eq.s32.totalorder %v156_v0, %v908_v1 }
  0x7f   : > { %v691_v2 = vsel %vm173_vm15, 1.0, %v833_v4  ;;  %544 = vmatpush.msrb.mxu0 %v375_v14 }
  0x80   : > { %372 = vmatpush.msra.mxu1 %v371_v48 }
  0x81   : > { %548 = vmatpush.msrb.mxu0 %v381_v22 }
  0x82   : > { %235 = vxpose.xlu0.b32.cont [14/16] (narrow) %v689_v40, 8  ;;  %378 = vmatpush.msra.mxu1 %v377_v3 }
  0x83   : > { %552 = vmatpush.msrb.mxu0 %v387_v39 }
  0x84   : > { %384 = vmatpush.msra.mxu1 %v383_v11 }
  0x86   : > { %390 = vmatpush.msra.mxu1 %v389_v13 }
  0x88   : > { %559 = vmatpush.msrb.mxu1 %v946_v25 }
  0x8a   : > { %236 = vxpose.xlu0.b32.cont [15/16] (narrow) %v690_v15, 8  ;;  %561 = vmatpush.msrb.mxu1 %v955_v28 }
  0x8c   : > { %563 = vmatpush.msrb.mxu1 %v966_v32 }
  0x8e   : > { %565 = vmatpush.msrb.mxu1 %v982_v38 }
  0x90   : > { %567 = vmatpush.msrb.mxu1 %v1001_v46 }
  0x92   : > { %237 = vxpose.xlu0.b32.end [16/16] (narrow) %v691_v2, 8  ;;  %569 = vmatpush.msrb.mxu1 %v1011_v51 }
  0x94   : > { %571 = vmatpush.msrb.mxu1 %v1031_v58 }
  0x96   : > { %573 = vmatpush.msrb.mxu1 %v1040_v63 }
  0x98   : > { %575 = vmatpush.msrb.mxu1 %v1068_v10 }
  0x9a   : > { %577 = vmatpush.msrb.mxu1 %v1086_v19 }
  0x9c   : > { %579 = vmatpush.msrb.mxu1 %v1099_v23 }
  0x9e   : > { %581 = vmatpush.msrb.mxu1 %v1101_v24 }
  0xa0   : > { %583 = vmatpush.msrb.mxu1 %v1104_v26 }
  0xa2   : > { %585 = vmatpush.msrb.mxu1 %v1113_v35 }
  0xa4   : > { %587 = vmatpush.msrb.mxu1 %v1146_v61 }
  0xa6   : > { %589 = vmatpush.msrb.mxu1 %v1151_v8 }
  0xbe   : > { %v238_v1 = vpop.trf.xlu0 }
  0xbf   : > { %v286_v4 = vand.u32 4294901760, %v238_v1 }
  0xc1   : > { %v287_v25 = vsub.f32 %v238_v1, %v286_v4  ;;  %392 = vmatmul.f32.vlgmr.msra.gmra.mxu1 %v286_v4 }
  0xc3   : > { %446 = vmatmul.f32.vlgmr.msra.gmra.mxu2 %v287_v25  ;;  %v288_v27 = vand.u32 4294901760, %v287_v25 }
  0xc5   : > { %485 = vmatmul.f32.vlgmr.msra.gmra.mxu3 %v288_v27  ;;  %v289_v28 = vsub.f32 %v287_v25, %v288_v27 }
  0xc7   : > { %v290_v30 = vand.u32 4294901760, %v289_v28 }
  0xc9   : > { %291 = vmatmul.f32.vlgmr.msra.gmra.mxu0 %v290_v30  ;;  %591 = vmatmul.f32.vlgmr.msrb.gmra.mxu1 %v286_v4 }
  0xd1   : > { %554 = vmatmul.f32.vlgmr.msrb.gmra.mxu0 %v286_v4 }
 0x13e   : > { %v393_v31 = vpop.f32.mrf.mxu1 }
 0x146   : > { %v292_v32 = vpop.f32.mrf.mxu0  ;;  %v447_v37 = vpop.f32.mrf.mxu2 }
 0x147   : > { %v394_v36 = vadd.f32 %v393_v31, %v292_v32  ;;  %v592_v51 = vpop.f32.mrf.mxu1 }
 0x148   : > { %v486_v44 = vpop.f32.mrf.mxu3 }
 0x149   : > { %v448_v38 = vadd.f32 %v447_v37, %v394_v36 }
 0x14b   : > { %v487_v45 = vadd.f32 %v486_v44, %v448_v38 }
 0x14e   : > { %v555_v46 = vpop.f32.mrf.mxu0 }
 0x14f   : > { %v556_v50 = vadd.f32 %v555_v46, %v487_v45 }
 0x151   : > { %v593_v52 = vadd.f32 %v592_v51, %v556_v50 }
 0x153   : > { %595 = vst [vmem:[%s135_s28] sm:$0xff] %v593_v52 }
 0x154   : > { %780 = shalt.err (!%p777_p3)
}
 0x155   : > { %696 = dma.vmem_to_hbm [thread:$0]  (%p889_p4), %s611_s29, 128, %s613_s30, %s597_s3  }
 0x156 PF: > { %p702_p5 = scmp.ge.s32.totalorder %s831_s14, 2  ;;  %s624_s16 = sand.u32 1, %s811_s9  }
 0x157   : > { %s625_s18 = scalar_lea.sflag [#allocation3], %s624_s16 }
 0x158   : > { %p699_p6 = pnand %p702_p5, %p896_p8 }
 0x15a   : > { %p700_p7 = pneg %p699_p6 }
 0x15c   : > { %806 = dma.done.wait (%p700_p7), %s625_s18, 128  }
 0x15d   : > { %808 = vsyncadd (%p700_p7), %s625_s18, 4294967168  ;;  %s15_s14 = sadd.s32 1, %s831_s14   ;;  %s1294_s9 = smov %s815_s10 }
 0x15e   : > { %p12_p9 = scmp.ge.s32.totalorder %s15_s14, 4   ;;  %s1295_s10 = smov %s819_s11 }
 0x15f   : > { %s1296_s11 = smov %s902_s22  ;;  %s1297_s12 = smov %s827_s13 }
 0x160   : > { %s1298_s13 = smov %s1300_s17  ;;  %14 = sbr.rel (!%p12_p9) target bundleno = 4 (0x4), region = 61 }
 0x165   :  { %631 = vsyncpa [#allocation3], 1 }
 0x166   :  { %633 = vsyncpa [#allocation3 + $0x1], 1 }

</bundles_post_ra>
